<compile_context>
chip_gen: v7x
topology: tpu7x:2x2x1
jax: 0.10.0
libtpu: 0.0.40
codegen_flags: <defaults>
</compile_context>

<pallas_src>
import jax
import jax.numpy as jnp
from jax.experimental import pallas as pl
from jax.experimental.pallas import tpu as pltpu


_SMALL_BYTES_THRESHOLD = 6 * 1024 * 1024   # grid-free path if A+B+C fit comfortably in VMEM
_VMEM_WORKSET_BUDGET = 16 * 1024 * 1024    # target per-step working set (incl. double buffering)
_VMEM_LIMIT_BYTES = 32 * 1024 * 1024       # scoped VMEM limit (safe on v5e/v6e/v7x)


def _round_up(x, m):
    return (x + m - 1) // m * m


def _cost(M, K, N, in_itemsize):
    return pl.CostEstimate(
        flops=2 * M * N * K,
        transcendentals=0,
        bytes_accessed=in_itemsize * (M * K + K * N) + 4 * M * N,
    )


# ----------------------------------------------------------------------------
# Small-problem path: no grid, no pipeline machinery. Whole operands in VMEM.
# ----------------------------------------------------------------------------
def _small_kernel(x1_ref, x2_ref, o_ref):
    o_ref[...] = jnp.dot(
        x1_ref[...], x2_ref[...], preferred_element_type=jnp.float32
    )


def _permute_matmul_small(x1, x2):
    M, K = x1.shape
    _, N = x2.shape
    return pl.pallas_call(
        _small_kernel,
        out_shape=jax.ShapeDtypeStruct((M, N), jnp.float32),
        in_specs=[
            pl.BlockSpec(memory_space=pltpu.MemorySpace.VMEM),
            pl.BlockSpec(memory_space=pltpu.MemorySpace.VMEM),
        ],
        out_specs=pl.BlockSpec(memory_space=pltpu.MemorySpace.VMEM),
        cost_estimate=_cost(M, K, N, x1.dtype.itemsize),
    )(x1, x2)


# ----------------------------------------------------------------------------
# Tiled 2-D path: grid = (M/tm, N/tn), full-K blocks, no accumulation needed.
# ----------------------------------------------------------------------------
def _matmul_2d_kernel(a_ref, b_ref, o_ref):
    o_ref[...] = jnp.dot(
        a_ref[...], b_ref[...], preferred_element_type=jnp.float32
    )


def _matmul_2d(x1, x2, tm, tn):
    M, K = x1.shape
    _, N = x2.shape
    grid = (pl.cdiv(M, tm), pl.cdiv(N, tn))
    return pl.pallas_call(
        _matmul_2d_kernel,
        out_shape=jax.ShapeDtypeStruct((M, N), jnp.float32),
        grid=grid,
        in_specs=[
            pl.BlockSpec((tm, K), lambda i, j: (i, 0)),
            pl.BlockSpec((K, tn), lambda i, j: (0, j)),
        ],
        out_specs=pl.BlockSpec((tm, tn), lambda i, j: (i, j)),
        compiler_params=pltpu.CompilerParams(
            dimension_semantics=("parallel", "parallel"),
            vmem_limit_bytes=_VMEM_LIMIT_BYTES,
        ),
        cost_estimate=_cost(M, K, N, x1.dtype.itemsize),
    )(x1, x2)


# ----------------------------------------------------------------------------
# Tiled 3-D path: grid = (M/tm, N/tn, K/tk), K innermost ("arbitrary").
# The f32 output block is resident across K, so accumulate directly into it.
# ----------------------------------------------------------------------------
def _matmul_3d_kernel(a_ref, b_ref, o_ref):
    @pl.when(pl.program_id(2) == 0)
    def _init():
        o_ref[...] = jnp.zeros_like(o_ref)

    o_ref[...] += jnp.dot(
        a_ref[...], b_ref[...], preferred_element_type=jnp.float32
    )


def _matmul_3d(x1, x2, tm, tn, tk):
    M, K = x1.shape
    _, N = x2.shape
    grid = (pl.cdiv(M, tm), pl.cdiv(N, tn), K // tk)
    return pl.pallas_call(
        _matmul_3d_kernel,
        out_shape=jax.ShapeDtypeStruct((M, N), jnp.float32),
        grid=grid,
        in_specs=[
            pl.BlockSpec((tm, tk), lambda i, j, k: (i, k)),
            pl.BlockSpec((tk, tn), lambda i, j, k: (k, j)),
        ],
        out_specs=pl.BlockSpec((tm, tn), lambda i, j, k: (i, j)),
        compiler_params=pltpu.CompilerParams(
            dimension_semantics=("parallel", "parallel", "arbitrary"),
            vmem_limit_bytes=_VMEM_LIMIT_BYTES,
        ),
        cost_estimate=_cost(M, K, N, x1.dtype.itemsize),
    )(x1, x2)


# ----------------------------------------------------------------------------
# Tile selection + dispatch.
# ----------------------------------------------------------------------------
def _pick_mn_tile(dim):
    # Full dim when small (lets ragged / non-aligned dims be "full-extent" blocks),
    # otherwise big 128-/256-aligned tiles (MXU-friendly on all generations).
    if dim <= 256:
        return dim
    if dim >= 1024:
        return 512
    return 256


def _permute_matmul_tiled(x1, x2):
    M, K = x1.shape
    _, N = x2.shape
    itemsize = x1.dtype.itemsize

    tm = _pick_mn_tile(M)
    tn = _pick_mn_tile(N)

    # Largest K block that keeps the double-buffered working set under budget.
    out_bytes = 2 * tm * tn * 4
    tk_cap = (_VMEM_WORKSET_BUDGET - out_bytes) // (2 * (tm + tn) * itemsize)
    tk_cap = max(512, (tk_cap // 512) * 512)

    if K <= tk_cap:
        # Full-K blocks: pure 2-D parallel grid, no accumulation bookkeeping.
        return _matmul_2d(x1, x2, tm, tn)

    # K must be blocked; prefer a tile that divides K exactly (no padding).
    tk = next((c for c in (2048, 1536, 1024, 512) if c <= tk_cap and K % c == 0), 0)
    if tk == 0:
        # Rare fallback: pad only the K axis (both operands, with zeros) so the
        # K tail cannot corrupt the accumulation. M/N stay ragged (Pallas masks).
        tk = 512
        Kp = _round_up(K, tk)
        x1 = jnp.pad(x1, ((0, 0), (0, Kp - K)))
        x2 = jnp.pad(x2, ((0, Kp - K), (0, 0)))
    return _matmul_3d(x1, x2, tm, tn, tk)


# ----------------------------------------------------------------------------
# Public entry point (matches Model.forward semantics).
# ----------------------------------------------------------------------------
def permute_matmul(x1: jax.Array, x2: jax.Array, *, use_bf16: bool = False) -> jax.Array:
    M, K = x1.shape
    K2, N = x2.shape
    assert K == K2, f"inner dims must match, got {K} vs {K2}"

    v1 = x1  # x1.permute(0, 1) on a 2-D tensor is the identity
    if use_bf16:
        # bf16 inputs feed the v6e/v7x MXU at full rate; accumulation stays f32.
        v1 = v1.astype(jnp.bfloat16)
        x2 = x2.astype(jnp.bfloat16)

    total_bytes = (v1.size * v1.dtype.itemsize
                   + x2.size * x2.dtype.itemsize
                   + M * N * 4)
    if total_bytes <= _SMALL_BYTES_THRESHOLD:
        return _permute_matmul_small(v1, x2)
    return _permute_matmul_tiled(v1, x2)


if __name__ == "__main__":
    key = jax.random.PRNGKey(0)
    k1, k2, k3, k4, k5, k6 = jax.random.split(key, 6)

    # Note: the original script's (1,2)x(1,2) globals are matmul-incompatible
    # (file lives in jit_fail/); we use small compatible shapes consistent with
    # the forward's (M,K)@(K,N) semantics.
    M, K, N = 8, 32, 16
    x1 = jax.random.normal(k1, (M, K), dtype=jnp.float32)
    x2 = jax.random.normal(k2, (K, N), dtype=jnp.float32)
    out = jax.block_until_ready(permute_matmul(x1, x2))
    ref = jnp.dot(jnp.transpose(x1, (0, 1)), x2, precision=jax.lax.Precision.HIGHEST)
    assert out.shape == (M, N)
    assert jnp.allclose(out, ref, atol=1e-4, rtol=1e-5), "small-path mismatch vs reference"

    # Tiled 2-D (full-K) path: ragged M/N edge blocks, no wrapper-side padding.
    Mb, Kb, Nb = 500, 1536, 644
    xb1 = jax.random.normal(k3, (Mb, Kb), dtype=jnp.float32)
    xb2 = jax.random.normal(k4, (Kb, Nb), dtype=jnp.float32)
    out_b = jax.block_until_ready(permute_matmul(xb1, xb2))
    ref_b = jnp.dot(xb1, xb2, precision=jax.lax.Precision.HIGHEST)
    assert out_b.shape == (Mb, Nb)
    assert jnp.allclose(out_b, ref_b, atol=1e-2, rtol=1e-2), "2D tiled-path mismatch vs reference"

    # Tiled 3-D (K-blocked) path: accumulates directly into the output block.
    Mc, Kc, Nc = 256, 4096, 256
    xc1 = jax.random.normal(k5, (Mc, Kc), dtype=jnp.float32)
    xc2 = jax.random.normal(k6, (Kc, Nc), dtype=jnp.float32)
    out_c = jax.block_until_ready(permute_matmul(xc1, xc2))
    ref_c = jnp.dot(xc1, xc2, precision=jax.lax.Precision.HIGHEST)
    assert out_c.shape == (Mc, Nc)
    assert jnp.allclose(out_c, ref_c, atol=2e-2, rtol=1e-2), "3D tiled-path mismatch vs reference"

    print("KERNEL_OK")
</pallas_src>

<mosaic_0001>
module attributes {stable_mosaic.version = 11 : i64} {
  func.func @_small_kernel(%arg0: memref<8x32xf32, #tpu.memory_space<vmem>>, %arg1: memref<32x16xf32, #tpu.memory_space<vmem>>, %arg2: memref<8x16xf32, #tpu.memory_space<vmem>>) attributes {dimension_semantics = [], scalar_prefetch = 0 : i64, scratch_operands = 0 : i64, tpu.core_type = #tpu.core_type<tc>} {
    %c0 = arith.constant 0 : index
    %c0_0 = arith.constant 0 : index
    %0 = vector.load %arg0[%c0, %c0_0] : memref<8x32xf32, #tpu.memory_space<vmem>>, vector<8x32xf32>
    %c0_1 = arith.constant 0 : index
    %c0_2 = arith.constant 0 : index
    %1 = vector.load %arg1[%c0_1, %c0_2] : memref<32x16xf32, #tpu.memory_space<vmem>>, vector<32x16xf32>
    %cst = arith.constant dense<0.000000e+00> : vector<8x16xf32>
    %2 = tpu.matmul %0, %1, %cst {dimension_numbers = #tpu.dot_dimension_numbers<[1], [0], [0], [1], [0, 0, 1, 1], [], []>} : vector<8x32xf32>, vector<32x16xf32>, vector<8x16xf32> -> vector<8x16xf32>
    %c0_3 = arith.constant 0 : index
    %c0_4 = arith.constant 0 : index
    %3 = vector.load %arg2[%c0_3, %c0_4] : memref<8x16xf32, #tpu.memory_space<vmem>>, vector<8x16xf32>
    tpu.vector_store %arg2[%c0_3, %c0_4], %2 {strides = array<i32>} : memref<8x16xf32, #tpu.memory_space<vmem>>, vector<8x16xf32>,
    return
  }
}

</mosaic_0001>

<bundles_post_ra>
// kernel: tpu_custom_call.1
= control target key start
LH: loop header
LB: loop body
LE: loop exit
PB: predicated region body
PF: predicated region fallthrough
CT: control target
= control target key end

     0   :  { %v158_v3 = vmov 0.0|0.0   ;;  %vm159_vm0 = vmmov 0   ;;  %v160_v6 = vmov 0.0   ;;  %s204_s0 = inlined_call_operand.vmem [shape: f32[8,32], index: 0, kind: input, shape index: {}]   ;;  %s205_s1 = inlined_call_operand.vmem [shape: f32[32,16], index: 1, kind: input, shape index: {}]   ;;  %s206_s2 = inlined_call_operand.hbm [shape: f32[8,16], index: 2, kind: output, shape index: {}]  }
   0x1   :  { %v13_v0 = vld [vmem:[%s205_s1] sm:$0xff]  ;;  %v14_v1 = vld [vmem:[%s205_s1 + $0x8] sm:$0xff]  ;;  %v15_v2 = vld [vmem:[%s205_s1 + $0x10] sm:$0xff]  ;;  %124 = vmatprep.subr.bf16.mxu0 %v158_v3  ;;  %121 = vmatprep.mubr.msk.f32.mxu0 %vm159_vm0, %v160_v6 }
   0x2   :  { %v125_v4 = vpack.c.bf16 %v14_v1, %v13_v0  ;;  %v16_v5 = vld [vmem:[%s205_s1 + $0x18] sm:$0xff] }
   0x3   :  { %7 = vsyncpa [#allocation3], 0  ;;  %v128_v7 = vpack.c.bf16 %v16_v5, %v15_v2  ;;  %v12_v8 = vld [vmem:[%s204_s0] sm:$0xff]  ;;  %vm17_vm1 = vcmask 261120   ;;  %s161_s19 = smov [#allocation2]   ;;  %vm91_vm2 = vcmask 130048  }
   0x4   :  { %126 = vmatpush3.bf16.msra.mxu0 %v125_v4  ;;  %s99_s20 = sshll.u32 %s161_s19, 4  ;;  %s100_s20 = int_to_ptr.vmem [resolvable:$true] %s99_s20 }
   0x5   :  { %127 = vmatprep.subr.bf16.mxu0 %v158_v3  ;;  %s134_s1 = scalar_lea.vmem %s100_s20, 128  ;;  %p139_p1 = scmp.lt.s32.totalorder %s100_s20, %s100_s20 }
   0x6   :  { %p135_p0 = scmp.ne.s32.totalorder %s100_s20, %s134_s1  ;;  %p140_p2 = scmp.lt.s32.totalorder %s134_s1, %s134_s1 }
   0x8   :  { %129 = vmatpush3.bf16.msra.mxu0 %v128_v7  ;;  %p141_p3 = por %p140_p2, %p139_p1 }
   0xa   :  { %p142_p4 = pnand %p141_p3, %p135_p0 }
   0xb   :  { %122 = vmatmul.mubr.msk.f32.vlgmr.msra.gmra.mrb[0].mxu0 %vm17_vm1, %v12_v8 }
  0xde   :  { %v87_v9 = vpop.f32.mrb[0].mxu0 }
  0xdf   :  { %92 = vst.msk [vmem:[#allocation2] sm:$0xff] %vm91_vm2, %v87_v9  ;;  %v123_v10 = vpop.f32.mrb[1].mxu0 }
  0xe0   :  { %145 = shalt.err (!%p142_p4)
}
  0xe1   :  { %s146_s0 = scalar_lea.hbm %s206_s2, 128 }
  0xe2   :  { %p147_p5 = scmp.ne.s32.totalorder %s206_s2, %s146_s0  ;;  %p150_p6 = scmp.lt.u32.totalorder %s146_s0, %s206_s2 }
  0xe4   :  { %p152_p7 = pnand %p150_p6, %p147_p5 }
  0xe6   :  { %155 = shalt.err (!%p152_p7)
}
  0xe7   :  { %102 = dma.vmem_to_hbm [thread:$0]  %s100_s20, 128, %s206_s2, [#allocation3]  }
  0xe8   :  { %156 = dma.done.wait [#allocation3], 128  }
  0xe9   :  { %157 = vsyncadd [#allocation3], 4294967168 }
  0xea   :  { %106 = vsyncpa [#allocation3], 1 }

</bundles_post_ra>
